<compile_context>
chip_gen: v7x
topology: tpu7x:2x2x1
jax: 0.10.0
libtpu: 0.0.40
codegen_flags: <defaults>
</compile_context>

<pallas_src>
import jax
import jax.numpy as jnp
import numpy as np
from jax.experimental import pallas as pl
from jax.experimental.pallas import tpu as pltpu


# ----------------------------- fused Pallas kernel ---------------------------------

def mnist_cnn3_fused_kernel(xe_ref, xo_ref, mc_ref, bc_ref, w1_ref, b1_ref,
                            w2_ref, b2_ref, out_ref):
    """Whole forward pass for one batch tile.

    xe_ref : (7, TB, 256) bf16  7x34 padded-image window for even conv rows oh=2*ph (238 + 0-pad)
    xo_ref : (7, TB, 256) bf16  same for odd conv rows oh=2*ph+1
    mc_ref : (256, 128)   bf16  conv-as-matmul matrix; col = dw*64 + (c*7+pw), 56->64 0-pad per dw
    bc_ref : (1, 64)      f32   conv bias per (c*7+pw) column (0 in pad lanes)
    w1_ref : (7, 64, 32)  f32   fc1 weights regrouped per pooled row ph (NCHW flatten folded in)
    b1_ref : (1, 32)      f32
    w2_ref : (32, 128)    f32   fc2 weights zero-padded from 10 to 128 output lanes
    b2_ref : (1, 128)     f32   fc2 bias; padded lanes = -1e30 so log_softmax ignores them
    out_ref: (TB, 128)    f32   log-probs in lanes [0:10]; lane-dense (unmasked) store
    """
    tb = out_ref.shape[0]
    mc = mc_ref[...]

    # conv(7x7, s=2, p=3): one matmul per output-row parity; rows ordered (ph, b).
    lhs_e = xe_ref[...].reshape(7 * tb, 256)
    lhs_o = xo_ref[...].reshape(7 * tb, 256)
    acc_e = jnp.dot(lhs_e, mc, preferred_element_type=jnp.float32)   # (7*TB, 128)
    acc_o = jnp.dot(lhs_o, mc, preferred_element_type=jnp.float32)   # (7*TB, 128)

    # 2x2 maxpool on the raw accumulators, THEN bias + ReLU (both monotone => exact).
    h = jnp.maximum(acc_e, acc_o)                  # max over dh  -> (7*TB, 128)
    p = jnp.maximum(h[:, :64], h[:, 64:])          # max over dw  -> (7*TB, 64), cols (c*7+pw)
    pooled = jnp.maximum(p + bc_ref[...], 0.0)     # bias + ReLU on the pooled tensor

    # fc1: contraction over (c,pw) via matmul, over ph by accumulating contiguous row slices.
    z1 = jnp.dot(pooled[0:tb], w1_ref[0], preferred_element_type=jnp.float32)
    for ph in range(1, 7):
        z1 = z1 + jnp.dot(pooled[ph * tb:(ph + 1) * tb], w1_ref[ph],
                          preferred_element_type=jnp.float32)
    z1 = jnp.maximum(z1 + b1_ref[...], 0.0)        # (TB, 32)

    # fc2 + numerically-stable log_softmax, 128 lanes wide (pad lanes carry -1e30 bias).
    z2 = jnp.dot(z1, w2_ref[...], preferred_element_type=jnp.float32) + b2_ref[...]
    m = jnp.max(z2, axis=-1, keepdims=True)
    lse = jnp.log(jnp.sum(jnp.exp(z2 - m), axis=-1, keepdims=True))
    out_ref[...] = (z2 - m - lse).astype(out_ref.dtype)


# ------------------------- one-time parameter preparation --------------------------

def prepare_params(params):
    """Torch-layout params -> kernel-ready matrices. Done ONCE, outside the forward path."""
    wc = np.asarray(params["wc"], np.float32).reshape(8, 7, 7)   # (c, kh, kw)
    bc = np.asarray(params["bc"], np.float32)                    # (8,)
    w1 = np.asarray(params["w1"], np.float32)                    # (32, 392)
    b1 = np.asarray(params["b1"], np.float32)                    # (32,)
    w2 = np.asarray(params["w2"], np.float32)                    # (10, 32)
    b2 = np.asarray(params["b2"], np.float32)                    # (10,)

    # Conv-as-matmul.  LHS row (one conv output row oh of one image) is the 7x34 window of the
    # padded image flattened as k = r*34 + j (238, zero-padded to 256).  Output column
    # n = dw*64 + c*7 + pw (pool col pw, pool offset dw, channel c); per-dw block 56 -> 64 pad.
    # Conv output col ow = 2*pw + dw uses padded cols [4*pw+2*dw, 4*pw+2*dw+6], so the entry
    # is wc[c, r, j - (4*pw + 2*dw)] when that kw index lies in [0, 6], else 0.
    M = np.zeros((7, 34, 2, 8, 7), np.float32)        # (r, j, dw, c, pw)
    w_khwc = np.transpose(wc, (1, 2, 0))              # (kh, kw, c)
    for dw in range(2):
        for pw in range(7):
            j0 = 4 * pw + 2 * dw
            M[:, j0:j0 + 7, dw, :, pw] = w_khwc
    M = M.reshape(238, 2, 56)                         # K x (dw, c*7+pw)
    M = np.pad(M, ((0, 18), (0, 0), (0, 8)))          # K 238->256, cc 56->64
    mconv = M.reshape(256, 128)

    bconv = np.zeros((1, 64), np.float32)
    bconv[0, :56] = np.repeat(bc, 7)                  # bias per (c*7 + pw) column

    # fc1: torch flatten index = c*49 + ph*7 + pw  ->  per-ph slab (c*7+pw, n), padded to 64.
    w1s = np.transpose(w1.reshape(32, 8, 7, 7), (2, 1, 3, 0)).reshape(7, 56, 32)
    w1s = np.pad(w1s, ((0, 0), (0, 8), (0, 0))).astype(np.float32)   # (7, 64, 32)

    # fc2 padded to 128 output lanes for a lane-dense final store.
    w2p = np.zeros((32, 128), np.float32)
    w2p[:, :10] = w2.T
    b2p = np.full((1, 128), -1e30, np.float32)
    b2p[0, :10] = b2

    return dict(mconv=jnp.asarray(mconv, jnp.bfloat16),
                bconv=jnp.asarray(bconv),
                w1s=jnp.asarray(w1s), b1=jnp.asarray(b1.reshape(1, 32)),
                w2p=jnp.asarray(w2p), b2p=jnp.asarray(b2p))


# --------------------------------- forward ------------------------------------------

def _round_up(v, m):
    return (v + m - 1) // m * m


@jax.jit
def mnist_cnn3_forward(x, prepared):
    B = x.shape[0]
    TB = min(128, _round_up(max(1, -(-B // 4)), 8))   # >=2 grid steps for B>=16 (v7x megacore)
    Bp = _round_up(B, TB)

    # Host prep (one gather/pad pass, no separate transpose copy).  Padded image is 34x34;
    # the window for conv output row oh covers padded rows [2*oh, 2*oh+6].
    xp = jnp.pad(x.astype(jnp.bfloat16), ((0, Bp - B), (3, 3), (3, 3)))          # (Bp, 34, 34)
    xe = jnp.stack([xp[:, 4 * p:4 * p + 7, :] for p in range(7)], axis=0)        # even oh=2p
    xo = jnp.stack([xp[:, 4 * p + 2:4 * p + 9, :] for p in range(7)], axis=0)    # odd  oh=2p+1
    xe = jnp.pad(xe.reshape(7, Bp, 238), ((0, 0), (0, 0), (0, 18)))              # (7, Bp, 256)
    xo = jnp.pad(xo.reshape(7, Bp, 238), ((0, 0), (0, 0), (0, 18)))              # (7, Bp, 256)

    out = pl.pallas_call(
        mnist_cnn3_fused_kernel,
        out_shape=jax.ShapeDtypeStruct((Bp, 128), jnp.float32),
        grid=(Bp // TB,),
        in_specs=[
            pl.BlockSpec((7, TB, 256), lambda i: (0, i, 0)),
            pl.BlockSpec((7, TB, 256), lambda i: (0, i, 0)),
            pl.BlockSpec((256, 128), lambda i: (0, 0)),
            pl.BlockSpec((1, 64), lambda i: (0, 0)),
            pl.BlockSpec((7, 64, 32), lambda i: (0, 0, 0)),
            pl.BlockSpec((1, 32), lambda i: (0, 0)),
            pl.BlockSpec((32, 128), lambda i: (0, 0)),
            pl.BlockSpec((1, 128), lambda i: (0, 0)),
        ],
        out_specs=pl.BlockSpec((TB, 128), lambda i: (i, 0)),
        compiler_params=pltpu.CompilerParams(dimension_semantics=("parallel",)),
    )(xe, xo, prepared["mconv"], prepared["bconv"], prepared["w1s"],
      prepared["b1"], prepared["w2p"], prepared["b2p"])

    return out[:B, :10]


# ------------------------------ reference & params ----------------------------------

def init_params(key):
    """Deterministic synthetic init with the exact shapes from MNISTCNN3.__init__
    (uniform fan-in bounds like torch's default; synthetic values, not a checkpoint)."""
    k = jax.random.split(key, 6)
    f32 = jnp.float32
    bnd_c = 1.0 / jnp.sqrt(49.0)      # conv1: in=1, kernel 7x7
    bnd_1 = 1.0 / jnp.sqrt(392.0)     # lin1: in=8*7*7
    bnd_2 = 1.0 / jnp.sqrt(32.0)      # lin2: in=32
    return dict(
        wc=jax.random.uniform(k[0], (8, 1, 7, 7), f32, -bnd_c, bnd_c),
        bc=jax.random.uniform(k[1], (8,), f32, -bnd_c, bnd_c),
        w1=jax.random.uniform(k[2], (32, 392), f32, -bnd_1, bnd_1),
        b1=jax.random.uniform(k[3], (32,), f32, -bnd_1, bnd_1),
        w2=jax.random.uniform(k[4], (10, 32), f32, -bnd_2, bnd_2),
        b2=jax.random.uniform(k[5], (10,), f32, -bnd_2, bnd_2),
    )


def reference_forward(x, params):
    """Pure-JAX full-precision reference with identical math, for a correctness cross-check."""
    B = x.shape[0]
    hp = jax.lax.Precision.HIGHEST
    conv = jax.lax.conv_general_dilated(
        x[:, None, :, :].astype(jnp.float32), params["wc"],
        window_strides=(2, 2), padding=((3, 3), (3, 3)),
        dimension_numbers=("NCHW", "OIHW", "NCHW"), precision=hp)
    conv = jnp.maximum(conv + params["bc"][None, :, None, None], 0.0)   # (B, 8, 14, 14)
    pooled = conv.reshape(B, 8, 7, 2, 7, 2).max(axis=(3, 5))            # (B, 8, 7, 7)
    act = pooled.reshape(B, 392)                                        # NCHW flatten
    z1 = jnp.maximum(jnp.dot(act, params["w1"].T, precision=hp) + params["b1"], 0.0)
    z2 = jnp.dot(z1, params["w2"].T, precision=hp) + params["b2"]
    return jax.nn.log_softmax(z2, axis=-1)


if __name__ == "__main__":
    key = jax.random.PRNGKey(0)
    pkey, xkey = jax.random.split(key)
    params = init_params(pkey)
    prepared = prepare_params(params)     # hoisted one-time weight prep
    # lin1 = Linear(8*7*7, 32) fixes the spatial size at 28x28 (MNIST); batch kept small.
    x = jax.random.normal(xkey, (2, 28, 28), jnp.float32)

    out = jax.block_until_ready(mnist_cnn3_forward(x, prepared))
    ref = reference_forward(x, params)

    assert out.shape == (2, 10)
    assert bool(jnp.all(jnp.isfinite(out)))
    # bf16 conv operands (f32 MXU accumulation) vs the HIGHEST-precision f32 reference.
    assert bool(jnp.allclose(out, ref, atol=2e-2, rtol=2e-2)), float(jnp.max(jnp.abs(out - ref)))
    print("KERNEL_OK")
</pallas_src>

<mosaic_0001>
module attributes {stable_mosaic.version = 11 : i64} {
  func.func @mnist_cnn3_fused_kernel(%arg0: i32, %arg1: memref<7x8x256xbf16, #tpu.memory_space<vmem>>, %arg2: memref<7x8x256xbf16, #tpu.memory_space<vmem>>, %arg3: memref<256x128xbf16, #tpu.memory_space<vmem>>, %arg4: memref<1x64xf32, #tpu.memory_space<vmem>>, %arg5: memref<7x64x32xf32, #tpu.memory_space<vmem>>, %arg6: memref<1x32xf32, #tpu.memory_space<vmem>>, %arg7: memref<32x128xf32, #tpu.memory_space<vmem>>, %arg8: memref<1x128xf32, #tpu.memory_space<vmem>>, %arg9: memref<8x128xf32, #tpu.memory_space<vmem>>) attributes {dimension_semantics = [#tpu.dimension_semantics<parallel>], iteration_bounds = array<i64: 1>, scalar_prefetch = 0 : i64, scratch_operands = 0 : i64, tpu.core_type = #tpu.core_type<tc>, window_params = [{transform_indices = @transform_0, window_bounds = array<i64: 7, 8, 256>}, {transform_indices = @transform_1, window_bounds = array<i64: 7, 8, 256>}, {pipeline_mode = #tpu.pipeline_mode<synchronous>, transform_indices = @transform_2, window_bounds = array<i64: 256, 128>}, {pipeline_mode = #tpu.pipeline_mode<synchronous>, transform_indices = @transform_3, window_bounds = array<i64: 1, 64>}, {pipeline_mode = #tpu.pipeline_mode<synchronous>, transform_indices = @transform_4, window_bounds = array<i64: 7, 64, 32>}, {pipeline_mode = #tpu.pipeline_mode<synchronous>, transform_indices = @transform_5, window_bounds = array<i64: 1, 32>}, {pipeline_mode = #tpu.pipeline_mode<synchronous>, transform_indices = @transform_6, window_bounds = array<i64: 32, 128>}, {pipeline_mode = #tpu.pipeline_mode<synchronous>, transform_indices = @transform_7, window_bounds = array<i64: 1, 128>}, {transform_indices = @transform_8, window_bounds = array<i64: 8, 128>}]} {
    %c0 = arith.constant 0 : index
    %c0_0 = arith.constant 0 : index
    %0 = vector.load %arg3[%c0, %c0_0] : memref<256x128xbf16, #tpu.memory_space<vmem>>, vector<256x128xbf16>
    %c0_1 = arith.constant 0 : index
    %c0_2 = arith.constant 0 : index
    %c0_3 = arith.constant 0 : index
    %1 = vector.load %arg1[%c0_1, %c0_2, %c0_3] : memref<7x8x256xbf16, #tpu.memory_space<vmem>>, vector<7x8x256xbf16>
    %2 = vector.shape_cast %1 : vector<7x8x256xbf16> to vector<56x256xbf16>
    %c0_4 = arith.constant 0 : index
    %c0_5 = arith.constant 0 : index
    %c0_6 = arith.constant 0 : index
    %3 = vector.load %arg2[%c0_4, %c0_5, %c0_6] : memref<7x8x256xbf16, #tpu.memory_space<vmem>>, vector<7x8x256xbf16>
    %4 = vector.shape_cast %3 : vector<7x8x256xbf16> to vector<56x256xbf16>
    %cst = arith.constant dense<0.000000e+00> : vector<56x128xf32>
    %5 = tpu.matmul %2, %0, %cst {dimension_numbers = #tpu.dot_dimension_numbers<[1], [0], [0], [1], [0, 0, 1, 1], [], []>} : vector<56x256xbf16>, vector<256x128xbf16>, vector<56x128xf32> -> vector<56x128xf32>
    %cst_7 = arith.constant dense<0.000000e+00> : vector<56x128xf32>
    %6 = tpu.matmul %4, %0, %cst_7 {dimension_numbers = #tpu.dot_dimension_numbers<[1], [0], [0], [1], [0, 0, 1, 1], [], []>} : vector<56x256xbf16>, vector<256x128xbf16>, vector<56x128xf32> -> vector<56x128xf32>
    %7 = arith.maximumf %5, %6 : vector<56x128xf32>
    %8 = vector.extract_strided_slice %7 {offsets = [0, 0], sizes = [56, 64], strides = [1, 1]} : vector<56x128xf32> to vector<56x64xf32>
    %9 = vector.extract_strided_slice %7 {offsets = [0, 64], sizes = [56, 64], strides = [1, 1]} : vector<56x128xf32> to vector<56x64xf32>
    %10 = arith.maximumf %8, %9 : vector<56x64xf32>
    %c0_8 = arith.constant 0 : index
    %c0_9 = arith.constant 0 : index
    %11 = vector.load %arg4[%c0_8, %c0_9] : memref<1x64xf32, #tpu.memory_space<vmem>>, vector<1x64xf32>
    %12 = vector.broadcast %11 : vector<1x64xf32> to vector<56x64xf32>
    %13 = arith.addf %10, %12 : vector<56x64xf32>
    %cst_10 = arith.constant 0.000000e+00 : f32
    %14 = vector.broadcast %cst_10 : f32 to vector<56x64xf32>
    %15 = arith.maximumf %13, %14 : vector<56x64xf32>
    %16 = vector.extract_strided_slice %15 {offsets = [0, 0], sizes = [8, 64], strides = [1, 1]} : vector<56x64xf32> to vector<8x64xf32>
    %c0_11 = arith.constant 0 : index
    %c0_12 = arith.constant 0 : index
    %c0_13 = arith.constant 0 : index
    %17 = vector.load %arg5[%c0_11, %c0_12, %c0_13] : memref<7x64x32xf32, #tpu.memory_space<vmem>>, vector<1x64x32xf32>
    %18 = vector.shape_cast %17 : vector<1x64x32xf32> to vector<64x32xf32>
    %cst_14 = arith.constant dense<0.000000e+00> : vector<8x32xf32>
    %19 = tpu.matmul %16, %18, %cst_14 {dimension_numbers = #tpu.dot_dimension_numbers<[1], [0], [0], [1], [0, 0, 1, 1], [], []>} : vector<8x64xf32>, vector<64x32xf32>, vector<8x32xf32> -> vector<8x32xf32>
    %20 = vector.extract_strided_slice %15 {offsets = [8, 0], sizes = [8, 64], strides = [1, 1]} : vector<56x64xf32> to vector<8x64xf32>
    %c1 = arith.constant 1 : index
    %c0_15 = arith.constant 0 : index
    %c0_16 = arith.constant 0 : index
    %21 = vector.load %arg5[%c1, %c0_15, %c0_16] : memref<7x64x32xf32, #tpu.memory_space<vmem>>, vector<1x64x32xf32>
    %22 = vector.shape_cast %21 : vector<1x64x32xf32> to vector<64x32xf32>
    %cst_17 = arith.constant dense<0.000000e+00> : vector<8x32xf32>
    %23 = tpu.matmul %20, %22, %cst_17 {dimension_numbers = #tpu.dot_dimension_numbers<[1], [0], [0], [1], [0, 0, 1, 1], [], []>} : vector<8x64xf32>, vector<64x32xf32>, vector<8x32xf32> -> vector<8x32xf32>
    %24 = arith.addf %19, %23 : vector<8x32xf32>
    %25 = vector.extract_strided_slice %15 {offsets = [16, 0], sizes = [8, 64], strides = [1, 1]} : vector<56x64xf32> to vector<8x64xf32>
    %c2 = arith.constant 2 : index
    %c0_18 = arith.constant 0 : index
    %c0_19 = arith.constant 0 : index
    %26 = vector.load %arg5[%c2, %c0_18, %c0_19] : memref<7x64x32xf32, #tpu.memory_space<vmem>>, vector<1x64x32xf32>
    %27 = vector.shape_cast %26 : vector<1x64x32xf32> to vector<64x32xf32>
    %cst_20 = arith.constant dense<0.000000e+00> : vector<8x32xf32>
    %28 = tpu.matmul %25, %27, %cst_20 {dimension_numbers = #tpu.dot_dimension_numbers<[1], [0], [0], [1], [0, 0, 1, 1], [], []>} : vector<8x64xf32>, vector<64x32xf32>, vector<8x32xf32> -> vector<8x32xf32>
    %29 = arith.addf %24, %28 : vector<8x32xf32>
    %30 = vector.extract_strided_slice %15 {offsets = [24, 0], sizes = [8, 64], strides = [1, 1]} : vector<56x64xf32> to vector<8x64xf32>
    %c3 = arith.constant 3 : index
    %c0_21 = arith.constant 0 : index
    %c0_22 = arith.constant 0 : index
    %31 = vector.load %arg5[%c3, %c0_21, %c0_22] : memref<7x64x32xf32, #tpu.memory_space<vmem>>, vector<1x64x32xf32>
    %32 = vector.shape_cast %31 : vector<1x64x32xf32> to vector<64x32xf32>
    %cst_23 = arith.constant dense<0.000000e+00> : vector<8x32xf32>
    %33 = tpu.matmul %30, %32, %cst_23 {dimension_numbers = #tpu.dot_dimension_numbers<[1], [0], [0], [1], [0, 0, 1, 1], [], []>} : vector<8x64xf32>, vector<64x32xf32>, vector<8x32xf32> -> vector<8x32xf32>
    %34 = arith.addf %29, %33 : vector<8x32xf32>
    %35 = vector.extract_strided_slice %15 {offsets = [32, 0], sizes = [8, 64], strides = [1, 1]} : vector<56x64xf32> to vector<8x64xf32>
    %c4 = arith.constant 4 : index
    %c0_24 = arith.constant 0 : index
    %c0_25 = arith.constant 0 : index
    %36 = vector.load %arg5[%c4, %c0_24, %c0_25] : memref<7x64x32xf32, #tpu.memory_space<vmem>>, vector<1x64x32xf32>
    %37 = vector.shape_cast %36 : vector<1x64x32xf32> to vector<64x32xf32>
    %cst_26 = arith.constant dense<0.000000e+00> : vector<8x32xf32>
    %38 = tpu.matmul %35, %37, %cst_26 {dimension_numbers = #tpu.dot_dimension_numbers<[1], [0], [0], [1], [0, 0, 1, 1], [], []>} : vector<8x64xf32>, vector<64x32xf32>, vector<8x32xf32> -> vector<8x32xf32>
    %39 = arith.addf %34, %38 : vector<8x32xf32>
    %40 = vector.extract_strided_slice %15 {offsets = [40, 0], sizes = [8, 64], strides = [1, 1]} : vector<56x64xf32> to vector<8x64xf32>
    %c5 = arith.constant 5 : index
    %c0_27 = arith.constant 0 : index
    %c0_28 = arith.constant 0 : index
    %41 = vector.load %arg5[%c5, %c0_27, %c0_28] : memref<7x64x32xf32, #tpu.memory_space<vmem>>, vector<1x64x32xf32>
    %42 = vector.shape_cast %41 : vector<1x64x32xf32> to vector<64x32xf32>
    %cst_29 = arith.constant dense<0.000000e+00> : vector<8x32xf32>
    %43 = tpu.matmul %40, %42, %cst_29 {dimension_numbers = #tpu.dot_dimension_numbers<[1], [0], [0], [1], [0, 0, 1, 1], [], []>} : vector<8x64xf32>, vector<64x32xf32>, vector<8x32xf32> -> vector<8x32xf32>
    %44 = arith.addf %39, %43 : vector<8x32xf32>
    %45 = vector.extract_strided_slice %15 {offsets = [48, 0], sizes = [8, 64], strides = [1, 1]} : vector<56x64xf32> to vector<8x64xf32>
    %c6 = arith.constant 6 : index
    %c0_30 = arith.constant 0 : index
    %c0_31 = arith.constant 0 : index
    %46 = vector.load %arg5[%c6, %c0_30, %c0_31] : memref<7x64x32xf32, #tpu.memory_space<vmem>>, vector<1x64x32xf32>
    %47 = vector.shape_cast %46 : vector<1x64x32xf32> to vector<64x32xf32>
    %cst_32 = arith.constant dense<0.000000e+00> : vector<8x32xf32>
    %48 = tpu.matmul %45, %47, %cst_32 {dimension_numbers = #tpu.dot_dimension_numbers<[1], [0], [0], [1], [0, 0, 1, 1], [], []>} : vector<8x64xf32>, vector<64x32xf32>, vector<8x32xf32> -> vector<8x32xf32>
    %49 = arith.addf %44, %48 : vector<8x32xf32>
    %c0_33 = arith.constant 0 : index
    %c0_34 = arith.constant 0 : index
    %50 = vector.load %arg6[%c0_33, %c0_34] : memref<1x32xf32, #tpu.memory_space<vmem>>, vector<1x32xf32>
    %51 = vector.broadcast %50 : vector<1x32xf32> to vector<8x32xf32>
    %52 = arith.addf %49, %51 : vector<8x32xf32>
    %cst_35 = arith.constant 0.000000e+00 : f32
    %53 = vector.broadcast %cst_35 : f32 to vector<8x32xf32>
    %54 = arith.maximumf %52, %53 : vector<8x32xf32>
    %c0_36 = arith.constant 0 : index
    %c0_37 = arith.constant 0 : index
    %55 = vector.load %arg7[%c0_36, %c0_37] : memref<32x128xf32, #tpu.memory_space<vmem>>, vector<32x128xf32>
    %cst_38 = arith.constant dense<0.000000e+00> : vector<8x128xf32>
    %56 = tpu.matmul %54, %55, %cst_38 {dimension_numbers = #tpu.dot_dimension_numbers<[1], [0], [0], [1], [0, 0, 1, 1], [], []>} : vector<8x32xf32>, vector<32x128xf32>, vector<8x128xf32> -> vector<8x128xf32>
    %c0_39 = arith.constant 0 : index
    %c0_40 = arith.constant 0 : index
    %57 = vector.load %arg8[%c0_39, %c0_40] : memref<1x128xf32, #tpu.memory_space<vmem>>, vector<1x128xf32>
    %58 = vector.broadcast %57 : vector<1x128xf32> to vector<8x128xf32>
    %59 = arith.addf %56, %58 : vector<8x128xf32>
    %cst_41 = arith.constant dense<0xFF800000> : vector<8xf32>
    %60 = vector.multi_reduction <maximumf>, %59, %cst_41 [1] : vector<8x128xf32> to vector<8xf32>
    %61 = vector.shape_cast %60 : vector<8xf32> to vector<8x1xf32>
    %62 = vector.broadcast %61 : vector<8x1xf32> to vector<8x128xf32>
    %63 = arith.subf %59, %62 : vector<8x128xf32>
    %64 = math.exp %63 : vector<8x128xf32>
    %cst_42 = arith.constant dense<0.000000e+00> : vector<8xf32>
    %65 = vector.multi_reduction <add>, %64, %cst_42 [1] : vector<8x128xf32> to vector<8xf32>
    %66 = vector.shape_cast %65 : vector<8xf32> to vector<8x1xf32>
    %67 = math.log %66 : vector<8x1xf32>
    %68 = vector.broadcast %61 : vector<8x1xf32> to vector<8x128xf32>
    %69 = arith.subf %59, %68 : vector<8x128xf32>
    %70 = vector.broadcast %67 : vector<8x1xf32> to vector<8x128xf32>
    %71 = arith.subf %69, %70 : vector<8x128xf32>
    %c0_43 = arith.constant 0 : index
    %c0_44 = arith.constant 0 : index
    %72 = vector.load %arg9[%c0_43, %c0_44] : memref<8x128xf32, #tpu.memory_space<vmem>>, vector<8x128xf32>
    tpu.vector_store %arg9[%c0_43, %c0_44], %71 {strides = array<i32>} : memref<8x128xf32, #tpu.memory_space<vmem>>, vector<8x128xf32>,
    return
  }
  func.func @transform_0(%arg0: i32) -> (i32, i32, i32) {
    %c0_i32 = arith.constant 0 : i32
    %c0_i32_0 = arith.constant 0 : i32
    %c0_i32_1 = arith.constant 0 : i32
    return %c0_i32, %arg0, %c0_i32_0 : i32, i32, i32
  }
  func.func @transform_1(%arg0: i32) -> (i32, i32, i32) {
    %c0_i32 = arith.constant 0 : i32
    %c0_i32_0 = arith.constant 0 : i32
    %c0_i32_1 = arith.constant 0 : i32
    return %c0_i32, %arg0, %c0_i32_0 : i32, i32, i32
  }
  func.func @transform_2(%arg0: i32) -> (i32, i32) {
    %c0_i32 = arith.constant 0 : i32
    %c0_i32_0 = arith.constant 0 : i32
    %c0_i32_1 = arith.constant 0 : i32
    return %c0_i32, %c0_i32_0 : i32, i32
  }
  func.func @transform_3(%arg0: i32) -> (i32, i32) {
    %c0_i32 = arith.constant 0 : i32
    %c0_i32_0 = arith.constant 0 : i32
    %c0_i32_1 = arith.constant 0 : i32
    return %c0_i32, %c0_i32_0 : i32, i32
  }
  func.func @transform_4(%arg0: i32) -> (i32, i32, i32) {
    %c0_i32 = arith.constant 0 : i32
    %c0_i32_0 = arith.constant 0 : i32
    %c0_i32_1 = arith.constant 0 : i32
    %c0_i32_2 = arith.constant 0 : i32
    return %c0_i32, %c0_i32_0, %c0_i32_1 : i32, i32, i32
  }
  func.func @transform_5(%arg0: i32) -> (i32, i32) {
    %c0_i32 = arith.constant 0 : i32
    %c0_i32_0 = arith.constant 0 : i32
    %c0_i32_1 = arith.constant 0 : i32
    return %c0_i32, %c0_i32_0 : i32, i32
  }
  func.func @transform_6(%arg0: i32) -> (i32, i32) {
    %c0_i32 = arith.constant 0 : i32
    %c0_i32_0 = arith.constant 0 : i32
    %c0_i32_1 = arith.constant 0 : i32
    return %c0_i32, %c0_i32_0 : i32, i32
  }
  func.func @transform_7(%arg0: i32) -> (i32, i32) {
    %c0_i32 = arith.constant 0 : i32
    %c0_i32_0 = arith.constant 0 : i32
    %c0_i32_1 = arith.constant 0 : i32
    return %c0_i32, %c0_i32_0 : i32, i32
  }
  func.func @transform_8(%arg0: i32) -> (i32, i32) {
    %c0_i32 = arith.constant 0 : i32
    %c0_i32_0 = arith.constant 0 : i32
    return %arg0, %c0_i32 : i32, i32
  }
}

</mosaic_0001>

<bundles_post_ra>
// kernel: mnist_cnn3_forward.1
= control target key start
LH: loop header
LB: loop body
LE: loop exit
PB: predicated region body
PF: predicated region fallthrough
CT: control target
= control target key end

     0   :  { %v1644_v34 = vmov 0.0|0.0   ;;  %vm1645_vm0 = vmmov 0   ;;  %v1646_v61 = vmov 0.0   ;;  %s1647_s25 = smov 64   ;;  %vm454_vm1 = vcmask 523264   ;;  %s2068_s2 = inlined_call_operand.vmem [shape: bf16[256,128], index: 2, kind: input, shape index: {}]   ;;  %s2069_s0 = inlined_call_operand.vmem [shape: bf16[7,8,256], index: 0, kind: input, shape index: {}]   ;;  %s2070_s1 = inlined_call_operand.vmem [shape: bf16[7,8,256], index: 1, kind: input, shape index: {}]   ;;  %s2071_s4 = inlined_call_operand.vmem [shape: f32[7,64,32], index: 4, kind: input, shape index: {}]   ;;  %s2072_s3 = inlined_call_operand.vmem [shape: f32[1,64], index: 3, kind: input, shape index: {}]   ;;  %s2073_s6 = inlined_call_operand.vmem [shape: f32[32,128], index: 6, kind: input, shape index: {}]   ;;  %s2074_s5 = inlined_call_operand.vmem [shape: f32[1,32], index: 5, kind: input, shape index: {}]   ;;  %s2075_s7 = inlined_call_operand.vmem [shape: f32[1,128], index: 7, kind: input, shape index: {}]   ;;  %s2076_s8 = inlined_call_operand.vmem [shape: f32[8,128], index: 8, kind: output, shape index: {}]  }
   0x1   :  { %v1602_v0 = vld [vmem:[%s2068_s2 + $0x40] sm:$0xff]   ;;  %v1604_v2 = vld [vmem:[%s2068_s2 + $0x48] sm:$0xff]   ;;  %v1606_v4 = vld [vmem:[%s2068_s2 + $0x50] sm:$0xff]   ;;  %vm1036_vm2 = vcmask 261120  }
   0x2   :  { %v1603_v1 = vld [vmem:[%s2068_s2] sm:$0xff]   ;;  %1216 = vmatprep.subr.bf16.mxu0 %v1602_v0  ;;  %1256 = vmatprep.subr.bf16.mxu1 %v1602_v0  ;;  %v1605_v3 = vld [vmem:[%s2068_s2 + $0x8] sm:$0xff]   ;;  %v1607_v5 = vld [vmem:[%s2068_s2 + $0x10] sm:$0xff]  }
   0x3   :  { %1217 = vmatpush3.bf16.msra.mxu0 %v1603_v1  ;;  %1257 = vmatpush3.bf16.msra.mxu1 %v1603_v1  ;;  %v1608_v6 = vld [vmem:[%s2068_s2 + $0x58] sm:$0xff]   ;;  %v1610_v8 = vld [vmem:[%s2068_s2 + $0x60] sm:$0xff]   ;;  %v1612_v10 = vld [vmem:[%s2068_s2 + $0x68] sm:$0xff]  }
   0x4   :  { %1218 = vmatprep.subr.bf16.mxu0 %v1604_v2  ;;  %1258 = vmatprep.subr.bf16.mxu1 %v1604_v2  ;;  %v1609_v7 = vld [vmem:[%s2068_s2 + $0x18] sm:$0xff]   ;;  %v1611_v9 = vld [vmem:[%s2068_s2 + $0x20] sm:$0xff]   ;;  %v1613_v13 = vld [vmem:[%s2068_s2 + $0x28] sm:$0xff]  }
   0x5   :  { %v1620_v11 = vld [vmem:[%s2069_s0 + $0x4] ss:$8 sps:$4 sm:$0xff]   ;;  %v1614_v14 = vld [vmem:[%s2068_s2 + $0x70] sm:$0xff]   ;;  %v1616_v16 = vld [vmem:[%s2068_s2 + $0x78] sm:$0xff]  }
   0x6   :  { %v1623_v12 = vld [vmem:[%s2070_s1 + $0x4] ss:$8 sps:$4 sm:$0xff]   ;;  %241 = vmatprep.mubr.bf16.mxu0 %v1620_v11  ;;  %v1615_v15 = vld [vmem:[%s2068_s2 + $0x30] sm:$0xff]   ;;  %v1617_v17 = vld [vmem:[%s2068_s2 + $0x38] sm:$0xff]  }
   0x7   :  { %1219 = vmatpush3.bf16.msra.mxu0 %v1605_v3  ;;  %1259 = vmatpush3.bf16.msra.mxu1 %v1605_v3  ;;  %v1618_v18 = vld [vmem:[%s2069_s0] ss:$8 sps:$4 sm:$0xff]   ;;  %v1624_v20 = vld [vmem:[%s2069_s0 + $0x14] ss:$8 sps:$4 sm:$0xff]   ;;  %v1628_v22 = vld [vmem:[%s2069_s0 + $0x10] ss:$8 sps:$4 sm:$0xff]  }
   0x8   :  { %1220 = vmatprep.subr.bf16.mxu0 %v1606_v4  ;;  %1260 = vmatprep.subr.bf16.mxu1 %v1606_v4  ;;  %v1621_v19 = vld [vmem:[%s2070_s1] ss:$8 sps:$4 sm:$0xff]   ;;  %v1626_v21 = vld [vmem:[%s2070_s1 + $0x14] ss:$8 sps:$4 sm:$0xff]   ;;  %v1629_v23 = vld [vmem:[%s2070_s1 + $0x10] ss:$8 sps:$4 sm:$0xff]  }
   0x9   :  { %342 = vmatprep.mubr.bf16.mxu1 %v1623_v12  ;;  %v1630_v24 = vld [vmem:[%s2069_s0 + $0x24] ss:$8 sps:$4 sm:$0xff]   ;;  %v68_v26 = vld [vmem:[%s2069_s0 + $0x30] sm:$0xff]  ;;  %v1634_v28 = vld [vmem:[%s2069_s0 + $0x20] ss:$8 sps:$4 sm:$0xff]  }
   0xa   :  { %v1632_v25 = vld [vmem:[%s2070_s1 + $0x24] ss:$8 sps:$4 sm:$0xff]   ;;  %v75_v27 = vld [vmem:[%s2070_s1 + $0x30] sm:$0xff]  ;;  %v1635_v29 = vld [vmem:[%s2070_s1 + $0x20] ss:$8 sps:$4 sm:$0xff]   ;;  %v1132_v30 = vcombine.high %v68_v26, %v68_v26  ;;  %v1131_v32 = vcombine.low %v68_v26, %v68_v26 }
   0xb   :  { %1221 = vmatpush3.bf16.msra.mxu0 %v1607_v5  ;;  %1261 = vmatpush3.bf16.msra.mxu1 %v1607_v5  ;;  %v1156_v31 = vcombine.high %v75_v27, %v75_v27  ;;  %v1155_v33 = vcombine.low %v75_v27, %v75_v27  ;;  %v1158_v35 = vld [vmem:[%s2071_s4 + $0x40] sm:$0xff]  ;;  %v1159_v36 = vld [vmem:[%s2071_s4 + $0x48] sm:$0xff]  ;;  %v1160_v37 = vld [vmem:[%s2071_s4 + $0x50] sm:$0xff] }
   0xc   :  { %1222 = vmatprep.subr.bf16.mxu0 %v1608_v6  ;;  %1262 = vmatprep.subr.bf16.mxu1 %v1608_v6  ;;  %v1509_v38 = vpack.c.bf16 %v1159_v36, %v1158_v35  ;;  %v1161_v39 = vld [vmem:[%s2071_s4 + $0x58] sm:$0xff]  ;;  %v437_v40 = vld [vmem:[%s2071_s4] sm:$0xff]  ;;  %v438_v41 = vld [vmem:[%s2071_s4 + $0x8] sm:$0xff] }
   0xd   :  { %v1521_v42 = vpack.c.bf16 %v438_v41, %v437_v40  ;;  %v439_v43 = vld [vmem:[%s2071_s4 + $0x10] sm:$0xff]  ;;  %v1512_v44 = vpack.c.bf16 %v1161_v39, %v1160_v37  ;;  %v440_v45 = vld [vmem:[%s2071_s4 + $0x18] sm:$0xff]  ;;  %v1162_v46 = vld [vmem:[%s2071_s4 + $0x60] sm:$0xff] }
   0xe   :  { %v1163_v47 = vld [vmem:[%s2071_s4 + $0x68] sm:$0xff]  ;;  %v1524_v48 = vpack.c.bf16 %v440_v45, %v439_v43  ;;  %v1164_v50 = vld [vmem:[%s2071_s4 + $0x70] sm:$0xff]  ;;  %v1165_v51 = vld [vmem:[%s2071_s4 + $0x78] sm:$0xff] }
   0xf   :  { %1223 = vmatpush3.bf16.msra.mxu0 %v1609_v7  ;;  %1263 = vmatpush3.bf16.msra.mxu1 %v1609_v7  ;;  %v1515_v49 = vpack.c.bf16 %v1163_v47, %v1162_v46  ;;  %v1518_v52 = vpack.c.bf16 %v1165_v51, %v1164_v50  ;;  %v441_v53 = vld [vmem:[%s2071_s4 + $0x20] sm:$0xff]  ;;  %v442_v54 = vld [vmem:[%s2071_s4 + $0x28] sm:$0xff]  ;;  %v443_v56 = vld [vmem:[%s2071_s4 + $0x30] sm:$0xff] }
  0x10   :  { %1224 = vmatprep.subr.bf16.mxu0 %v1610_v8  ;;  %1264 = vmatprep.subr.bf16.mxu1 %v1610_v8  ;;  %v1527_v55 = vpack.c.bf16 %v442_v54, %v441_v53  ;;  %v444_v57 = vld [vmem:[%s2071_s4 + $0x38] sm:$0xff]  ;;  %v1873_v50 = vld [vmem:[%s2072_s3] ss:$0 sm:$0xff]  ;;  %v1169_v54 = vld [vmem:[%s2071_s4 + $0x88] sm:$0xff] }
  0x11   :  { %v1530_v58 = vpack.c.bf16 %v444_v57, %v443_v56  ;;  %v1168_v53 = vld [vmem:[%s2071_s4 + $0x80] sm:$0xff] }
  0x12   :  { %v1533_v57 = vpack.c.bf16 %v1169_v54, %v1168_v53  ;;  %v1200_v53 = vld [vmem:[%s2071_s4 + $0x168] sm:$0xff] }
  0x13   :  { %1225 = vmatpush3.bf16.msra.mxu0 %v1611_v9  ;;  %1265 = vmatpush3.bf16.msra.mxu1 %v1611_v9 }
  0x14   :  { %1226 = vmatprep.subr.bf16.mxu0 %v1612_v10  ;;  %1266 = vmatprep.subr.bf16.mxu1 %v1612_v10 }
  0x17   :  { %1227 = vmatpush3.bf16.msra.mxu0 %v1613_v13  ;;  %1267 = vmatpush3.bf16.msra.mxu1 %v1613_v13 }
  0x18   :  { %1228 = vmatprep.subr.bf16.mxu0 %v1614_v14  ;;  %1268 = vmatprep.subr.bf16.mxu1 %v1614_v14 }
  0x1b   :  { %1229 = vmatpush3.bf16.msra.mxu0 %v1615_v15  ;;  %1269 = vmatpush3.bf16.msra.mxu1 %v1615_v15 }
  0x1c   :  { %1230 = vmatprep.subr.bf16.mxu0 %v1616_v16  ;;  %1270 = vmatprep.subr.bf16.mxu1 %v1616_v16 }
  0x1f   :  { %1231 = vmatpush3.bf16.msra.mxu0 %v1617_v17  ;;  %1271 = vmatpush3.bf16.msra.mxu1 %v1617_v17 }
  0x20   :  { %1508 = vmatprep.subr.bf16.mxu0 %v1644_v34  ;;  %1520 = vmatprep.subr.bf16.mxu1 %v1644_v34 }
  0x22   :  { %242 = vmatmul.mubr.bf16.vlgmr.msra.gmra.mrb[0].mxu0 %v1618_v18  ;;  %343 = vmatmul.mubr.bf16.vlgmr.msra.gmra.mrb[0].mxu1 %v1621_v19 }
  0x23   :  { %249 = vmatprep.mubr.bf16.mxu0 %v1624_v20  ;;  %350 = vmatprep.mubr.bf16.mxu1 %v1626_v21 }
  0x24   :  { %1510 = vmatpush3.bf16.msra.mxu0 %v1509_v38  ;;  %1522 = vmatpush3.bf16.msra.mxu1 %v1521_v42 }
  0x25   :  { %1511 = vmatprep.subr.bf16.mxu0 %v1644_v34  ;;  %1523 = vmatprep.subr.bf16.mxu1 %v1644_v34 }
  0x28   :  { %1513 = vmatpush3.bf16.msra.mxu0 %v1512_v44  ;;  %1525 = vmatpush3.bf16.msra.mxu1 %v1524_v48 }
  0x29   :  { %1514 = vmatprep.subr.bf16.mxu0 %v1644_v34  ;;  %1526 = vmatprep.subr.bf16.mxu1 %v1644_v34 }
  0x2a   :  { %250 = vmatmul.mubr.bf16.gmra.mrb[4].mxu0 %v1628_v22  ;;  %351 = vmatmul.mubr.bf16.gmra.mrb[4].mxu1 %v1629_v23 }
  0x2b   :  { %257 = vmatprep.mubr.bf16.mxu0 %v1630_v24  ;;  %358 = vmatprep.mubr.bf16.mxu1 %v1632_v25 }
  0x2c   :  { %1516 = vmatpush3.bf16.msra.mxu0 %v1515_v49  ;;  %1528 = vmatpush3.bf16.msra.mxu1 %v1527_v55 }
  0x2d   :  { %1517 = vmatprep.subr.bf16.mxu0 %v1644_v34  ;;  %1529 = vmatprep.subr.bf16.mxu1 %v1644_v34 }
  0x30   :  { %1519 = vmatpush3.bf16.msra.mxu0 %v1518_v52  ;;  %1531 = vmatpush3.bf16.msra.mxu1 %v1530_v58  ;;  %v1170_v58 = vld [vmem:[%s2071_s4 + $0x90] sm:$0xff] }
  0x31   :  { %1532 = vmatprep.subr.bf16.mxu0 %v1644_v34  ;;  %1544 = vmatprep.subr.bf16.mxu1 %v1644_v34 }
  0x32   :  { %258 = vmatmul.mubr.bf16.gmra.mrb[8].mxu0 %v1634_v28  ;;  %359 = vmatmul.mubr.bf16.gmra.mrb[8].mxu1 %v1635_v29 }
  0x33   :  { %265 = vmatprep.mubr.bf16.mxu0 %v1132_v30  ;;  %366 = vmatprep.mubr.bf16.mxu1 %v1156_v31 }
  0x3a   :  { %266 = vmatmul.mubr.bf16.gmra.mrb[12].mxu0 %v1131_v32  ;;  %367 = vmatmul.mubr.bf16.gmra.mrb[12].mxu1 %v1155_v33 }
  0x3b   :  { %1380 = vmatprep.mubr.msk.f32.mxu0 %vm1645_vm0, %v1646_v61  ;;  %1399 = vmatprep.mubr.msk.f32.mxu1 %vm1645_vm0, %v1646_v61 }
  0xf5   :  { %v1232_v59 = vpop.f32.mrb[0].mxu0  ;;  %v1272_v60 = vpop.f32.mrb[0].mxu1 }
  0xf6   :  { %v1233_v62 = vpop.f32.mrb[1].mxu0  ;;  %v1273_v63 = vpop.f32.mrb[1].mxu1 }
  0xf7   :  { %v1234_v0 = vadd.f32 %v1233_v62, %v1232_v59  ;;  %v1274_v1 = vadd.f32 %v1273_v63, %v1272_v60  ;;  %v1235_v2 = vpop.f32.mrb[2].mxu0  ;;  %v1275_v3 = vpop.f32.mrb[2].mxu1  ;;  %v1171_v62 = vld [vmem:[%s2071_s4 + $0x98] sm:$0xff]  ;;  %v1177_v63 = vld [vmem:[%s2071_s4 + $0xc0] sm:$0xff] }
  0xf8   :  { %v1236_v4 = vpop.f32.mrb[3].mxu0  ;;  %v1276_v5 = vpop.f32.mrb[3].mxu1 }
  0xf9   :  { %v1845_v6 = vmax.f32 %v1234_v0, %v1274_v1  ;;  %v1237_v7 = vadd.f32 %v1236_v4, %v1235_v2  ;;  %v1277_v8 = vadd.f32 %v1276_v5, %v1275_v3  ;;  %v1178_v0 = vld [vmem:[%s2071_s4 + $0xc8] sm:$0xff]  ;;  %v1536_v3 = vpack.c.bf16 %v1171_v62, %v1170_v58  ;;  %v1172_v5 = vld [vmem:[%s2071_s4 + $0xa0] sm:$0xff] }
  0xfa   :  { %v1545_v4 = vpack.c.bf16 %v1178_v0, %v1177_v63  ;;  %v1205_v62 = vld [vmem:[%s2071_s4 + $0x188] sm:$0xff] }
  0xfb   :  { %v375_v9 = vmax.f32 %v1237_v7, %v1277_v8  ;;  %v1173_v7 = vld [vmem:[%s2071_s4 + $0xa8] sm:$0xff]  ;;  %v1179_v8 = vld [vmem:[%s2071_s4 + $0xd0] sm:$0xff] }
  0xfd   :  { %v1238_v10 = vpop.f32.mrb[4].mxu0  ;;  %v1278_v11 = vpop.f32.mrb[4].mxu1  ;;  %390 = vrot.lane.b32.xlu0 %v375_v9, %s1647_s25 }
  0xfe   :  { %v1239_v12 = vpop.f32.mrb[5].mxu0  ;;  %v1279_v13 = vpop.f32.mrb[5].mxu1 }
  0xff   :  { %v1240_v14 = vadd.f32 %v1239_v12, %v1238_v10  ;;  %v1280_v15 = vadd.f32 %v1279_v13, %v1278_v11  ;;  %v1241_v16 = vpop.f32.mrb[6].mxu0  ;;  %v1281_v17 = vpop.f32.mrb[6].mxu1  ;;  %v1539_v10 = vpack.c.bf16 %v1173_v7, %v1172_v5  ;;  %v1174_v12 = vld [vmem:[%s2071_s4 + $0xb0] sm:$0xff]  ;;  %v1209_v7 = vld [vmem:[%s2071_s4 + $0x1a8] sm:$0xff] }
 0x100   :  { %v1242_v18 = vpop.f32.mrb[7].mxu0  ;;  %v1282_v19 = vpop.f32.mrb[7].mxu1 }
 0x101   :  { %388 = vrot.lane.b32.xlu0 %v1845_v6, %s1647_s25  ;;  %v1243_v20 = vadd.f32 %v1242_v18, %v1241_v16  ;;  %v1283_v21 = vadd.f32 %v1282_v19, %v1281_v17  ;;  %v1850_v22 = vmax.f32 %v1240_v14, %v1280_v15  ;;  %v1175_v14 = vld [vmem:[%s2071_s4 + $0xb8] sm:$0xff]  ;;  %v1181_v15 = vld [vmem:[%s2071_s4 + $0xe0] sm:$0xff]  ;;  %v1182_v16 = vld [vmem:[%s2071_s4 + $0xe8] sm:$0xff] }
 0x102   :  { %v1542_v18 = vpack.c.bf16 %v1175_v14, %v1174_v12  ;;  %v1551_v19 = vpack.c.bf16 %v1182_v16, %v1181_v15  ;;  %v1211_v12 = vld [vmem:[%s2071_s4 + $0x1b8] sm:$0xff]  ;;  %v1026_v15 = vld [vmem:[%s2073_s6 + $0x8] sm:$0xff] }
 0x103   :  { %v1852_v23 = vmax.f32 %v1243_v20, %v1283_v21  ;;  %392 = vrot.lane.b32.xlu1 %v1850_v22, %s1647_s25  ;;  %v1183_v20 = vld [vmem:[%s2071_s4 + $0xf0] sm:$0xff] }
 0x105   :  { %v1244_v24 = vpop.f32.mrb[8].mxu0  ;;  %v1284_v25 = vpop.f32.mrb[8].mxu1 }
 0x106   :  { %v1245_v26 = vpop.f32.mrb[9].mxu0  ;;  %v1285_v27 = vpop.f32.mrb[9].mxu1 }
 0x107   :  { %v1246_v28 = vadd.f32 %v1245_v26, %v1244_v24  ;;  %v1286_v29 = vadd.f32 %v1285_v27, %v1284_v25  ;;  %v1247_v30 = vpop.f32.mrb[10].mxu0  ;;  %v1287_v31 = vpop.f32.mrb[10].mxu1  ;;  %394 = vrot.lane.b32.xlu1 %v1852_v23, %s1647_s25  ;;  %v1184_v24 = vld [vmem:[%s2071_s4 + $0xf8] sm:$0xff]  ;;  %v1186_v25 = vld [vmem:[%s2071_s4 + $0x100] sm:$0xff]  ;;  %v1187_v26 = vld [vmem:[%s2071_s4 + $0x108] sm:$0xff] }
 0x108   :  { %v1248_v32 = vpop.f32.mrb[11].mxu0  ;;  %v1288_v33 = vpop.f32.mrb[11].mxu1  ;;  %v1554_v27 = vpack.c.bf16 %v1184_v24, %v1183_v20 }
 0x109   :  { %v1858_v35 = vmax.f32 %v1246_v28, %v1286_v29  ;;  %v1249_v36 = vadd.f32 %v1248_v32, %v1247_v30  ;;  %v1289_v37 = vadd.f32 %v1288_v33, %v1287_v31  ;;  %v1188_v28 = vld [vmem:[%s2071_s4 + $0x110] sm:$0xff]  ;;  %v1189_v31 = vld [vmem:[%s2071_s4 + $0x118] sm:$0xff]  ;;  %v1195_v32 = vld [vmem:[%s2071_s4 + $0x140] sm:$0xff] }
 0x10a   :  { %v1196_v33 = vld [vmem:[%s2071_s4 + $0x148] sm:$0xff] }
 0x10b   :  { %v1860_v38 = vmax.f32 %v1249_v36, %v1289_v37  ;;  %396 = vrot.lane.b32.xlu0 %v1858_v35, %s1647_s25  ;;  %v1560_v36 = vpack.c.bf16 %v1189_v31, %v1188_v28  ;;  %v1569_v37 = vpack.c.bf16 %v1196_v33, %v1195_v32 }
 0x10d   :  { %v1250_v39 = vpop.f32.mrb[12].mxu0  ;;  %v1290_v40 = vpop.f32.mrb[12].mxu1  ;;  %398 = vrot.lane.b32.xlu1 %v1860_v38, %s1647_s25 }
 0x10e   :  { %v1251_v41 = vpop.f32.mrb[13].mxu0  ;;  %v1291_v42 = vpop.f32.mrb[13].mxu1 }
 0x10f   :  { %v1252_v43 = vadd.f32 %v1251_v41, %v1250_v39  ;;  %v1292_v44 = vadd.f32 %v1291_v42, %v1290_v40  ;;  %v1253_v45 = vpop.f32.mrb[14].mxu0  ;;  %v1293_v46 = vpop.f32.mrb[14].mxu1  ;;  %v1190_v39 = vld [vmem:[%s2071_s4 + $0x120] sm:$0xff]  ;;  %v1191_v41 = vld [vmem:[%s2071_s4 + $0x128] sm:$0xff]  ;;  %v1197_v42 = vld [vmem:[%s2071_s4 + $0x150] sm:$0xff] }
 0x110   :  { %v1254_v47 = vpop.f32.mrb[15].mxu0  ;;  %v1294_v48 = vpop.f32.mrb[15].mxu1  ;;  %v1563_v45 = vpack.c.bf16 %v1191_v41, %v1190_v39  ;;  %v1213_v39 = vld [vmem:[%s2074_s5] ss:$0 sm:$0xff] }
 0x111   :  { %v1866_v49 = vmax.f32 %v1252_v43, %v1292_v44  ;;  %v1198_v43 = vld [vmem:[%s2071_s4 + $0x158] sm:$0xff]  ;;  %v1192_v47 = vld [vmem:[%s2071_s4 + $0x130] sm:$0xff] }
 0x112   :  { %v1572_v46 = vpack.c.bf16 %v1198_v43, %v1197_v42 }
 0x113   :  { %400 = vrot.lane.b32.xlu0 %v1866_v49, %s1647_s25 }
 0x16f   :  { %v391_v51 = vpop.permute.xlu0 %390 }
 0x170   :  { %v410_v52 = vmax.f32 %v375_v9, %v391_v51  ;;  %v1180_v9 = vld [vmem:[%s2071_s4 + $0xd8] sm:$0xff] }
 0x171   :  { %v1548_v11 = vpack.c.bf16 %v1180_v9, %v1179_v8  ;;  %v1193_v51 = vld [vmem:[%s2071_s4 + $0x138] sm:$0xff] }
 0x172   :  { %v424_v55 = vadd.f32 %v1873_v50, %v410_v52  ;;  %v1199_v52 = vld [vmem:[%s2071_s4 + $0x160] sm:$0xff] }
 0x173   :  { %v389_v56 = vpop.permute.xlu0 %388 }
 0x174   :  { %v431_v59 = vmax.f32 %v424_v55, 0.0  ;;  %v409_v60 = vmax.f32 %v1845_v6, %v389_v56  ;;  %v1575_v55 = vpack.c.bf16 %v1200_v53, %v1199_v52  ;;  %v1201_v56 = vld [vmem:[%s2071_s4 + $0x170] sm:$0xff] }
 0x175   :  { %v393_v2 = vpop.permute.xlu1 %392 }
 0x176   :  { %v423_v1 = vadd.f32 %v1873_v50, %v409_v60  ;;  %1381 = vmatmul.mubr.msk.f32.vlgmr.msra.gmra.mrb[16].mxu0 %vm454_vm1, %v431_v59  ;;  %v411_v13 = vmax.f32 %v1850_v22, %v393_v2  ;;  %v1202_v59 = vld [vmem:[%s2071_s4 + $0x178] sm:$0xff]  ;;  %v1204_v60 = vld [vmem:[%s2071_s4 + $0x180] sm:$0xff]  ;;  %v1206_v2 = vld [vmem:[%s2071_s4 + $0x190] sm:$0xff] }
 0x177   :  { %1534 = vmatpush3.bf16.msra.mxu0 %v1533_v57  ;;  %1418 = vmatprep.mubr.msk.f32.mxu0 %vm1645_vm0, %v1646_v61  ;;  %v1578_v63 = vpack.c.bf16 %v1202_v59, %v1201_v56 }
 0x178   :  { %v430_v6 = vmax.f32 %v423_v1, 0.0  ;;  %1535 = vmatprep.subr.bf16.mxu0 %v1644_v34  ;;  %v425_v21 = vadd.f32 %v1873_v50, %v411_v13 }
 0x179   :  { %v395_v17 = vpop.permute.xlu1 %394 }
 0x17a   :  { %1400 = vmatmul.mubr.msk.f32.vlgmr.msra.gmra.mrb[16].mxu1 %vm454_vm1, %v430_v6  ;;  %v412_v22 = vmax.f32 %v1852_v23, %v395_v17  ;;  %v1557_v23 = vpack.c.bf16 %v1187_v26, %v1186_v25  ;;  %v432_v29 = vmax.f32 %v425_v21, 0.0  ;;  %v1208_v6 = vld [vmem:[%s2071_s4 + $0x1a0] sm:$0xff]  ;;  %v1028_v17 = vld [vmem:[%s2073_s6 + $0x18] sm:$0xff] }
 0x17b   :  { %1537 = vmatpush3.bf16.msra.mxu0 %v1536_v3  ;;  %1546 = vmatpush3.bf16.msra.mxu1 %v1545_v4  ;;  %v1207_v3 = vld [vmem:[%s2071_s4 + $0x198] sm:$0xff]  ;;  %v1587_v9 = vpack.c.bf16 %v1209_v7, %v1208_v6 }
 0x17c   :  { %1538 = vmatprep.subr.bf16.mxu0 %v1644_v34  ;;  %1547 = vmatprep.subr.bf16.mxu1 %v1644_v34  ;;  %v426_v30 = vadd.f32 %v1873_v50, %v412_v22  ;;  %v1584_v4 = vpack.c.bf16 %v1207_v3, %v1206_v2 }
 0x17d   :  { %1437 = vmatprep.mubr.msk.f32.mxu1 %vm1645_vm0, %v1646_v61  ;;  %v397_v44 = vpop.permute.xlu0 %396 }
 0x17e   :  { %v433_v40 = vmax.f32 %v426_v30, 0.0  ;;  %v413_v48 = vmax.f32 %v1858_v35, %v397_v44  ;;  %v1566_v35 = vpack.c.bf16 %v1193_v51, %v1192_v47  ;;  %v1214_v44 = vld [vmem:[%s2075_s7] ss:$0 sm:$0xff] }
 0x17f   :  { %1540 = vmatpush3.bf16.msra.mxu0 %v1539_v10  ;;  %1549 = vmatpush3.bf16.msra.mxu1 %v1548_v11  ;;  %v399_v54 = vpop.permute.xlu1 %398  ;;  %v1210_v11 = vld [vmem:[%s2071_s4 + $0x1b0] sm:$0xff] }
 0x180   :  { %1541 = vmatprep.subr.bf16.mxu0 %v1644_v34  ;;  %1550 = vmatprep.subr.bf16.mxu1 %v1644_v34  ;;  %v427_v57 = vadd.f32 %v1873_v50, %v413_v48  ;;  %v414_v58 = vmax.f32 %v1860_v38, %v399_v54  ;;  %v1581_v38 = vpack.c.bf16 %v1205_v62, %v1204_v60 }
 0x181   :  { %v1590_v13 = vpack.c.bf16 %v1211_v12, %v1210_v11 }
 0x182   :  { %v434_v0 = vmax.f32 %v427_v57, 0.0  ;;  %v428_v1 = vadd.f32 %v1873_v50, %v414_v58 }
 0x183   :  { %1543 = vmatpush3.bf16.msra.mxu0 %v1542_v18  ;;  %1552 = vmatpush3.bf16.msra.mxu1 %v1551_v19 }
 0x184   :  { %1553 = vmatprep.subr.bf16.mxu1 %v1644_v34  ;;  %1556 = vmatprep.subr.bf16.mxu0 %v1644_v34  ;;  %v435_v5 = vmax.f32 %v428_v1, 0.0 }
 0x185   :  { %v401_v8 = vpop.permute.xlu0 %400 }
 0x186   :  { %1419 = vmatmul.mubr.msk.f32.vlgmr.msra.gmra.mrb[18].mxu0 %vm454_vm1, %v432_v29  ;;  %v415_v10 = vmax.f32 %v1866_v49, %v401_v8  ;;  %v1025_v49 = vld [vmem:[%s2073_s6] sm:$0xff] }
 0x187   :  { %1555 = vmatpush3.bf16.msra.mxu1 %v1554_v27  ;;  %1558 = vmatpush3.bf16.msra.mxu0 %v1557_v23  ;;  %v1593_v16 = vpack.c.bf16 %v1026_v15, %v1025_v49 }
 0x188   :  { %1559 = vmatprep.subr.bf16.mxu0 %v1644_v34  ;;  %1568 = vmatprep.subr.bf16.mxu1 %v1644_v34  ;;  %v429_v14 = vadd.f32 %v1873_v50, %v415_v10  ;;  %v1027_v50 = vld [vmem:[%s2073_s6 + $0x10] sm:$0xff] }
 0x189   :  { %1456 = vmatprep.mubr.msk.f32.mxu0 %vm1645_vm0, %v1646_v61  ;;  %v1596_v18 = vpack.c.bf16 %v1028_v17, %v1027_v50 }
 0x18a   :  { %1438 = vmatmul.mubr.msk.f32.vlgmr.msra.gmra.mrb[18].mxu1 %vm454_vm1, %v433_v40 }
 0x18b   :  { %1561 = vmatpush3.bf16.msra.mxu0 %v1560_v36  ;;  %1570 = vmatpush3.bf16.msra.mxu1 %v1569_v37 }
 0x18c   :  { %1562 = vmatprep.subr.bf16.mxu0 %v1644_v34  ;;  %1571 = vmatprep.subr.bf16.mxu1 %v1644_v34 }
 0x18d   :  { %1475 = vmatprep.mubr.msk.f32.mxu1 %vm1645_vm0, %v1646_v61 }
 0x18f   :  { %1564 = vmatpush3.bf16.msra.mxu0 %v1563_v45  ;;  %1573 = vmatpush3.bf16.msra.mxu1 %v1572_v46 }
 0x190   :  { %1565 = vmatprep.subr.bf16.mxu0 %v1644_v34  ;;  %1574 = vmatprep.subr.bf16.mxu1 %v1644_v34 }
 0x193   :  { %1567 = vmatpush3.bf16.msra.mxu0 %v1566_v35  ;;  %1576 = vmatpush3.bf16.msra.mxu1 %v1575_v55 }
 0x194   :  { %1577 = vmatprep.subr.bf16.mxu1 %v1644_v34  ;;  %1580 = vmatprep.subr.bf16.mxu0 %v1644_v34 }
 0x196   :  { %1457 = vmatmul.mubr.msk.f32.vlgmr.msra.gmra.mrb[20].mxu0 %vm454_vm1, %v434_v0 }
 0x197   :  { %1579 = vmatpush3.bf16.msra.mxu1 %v1578_v63  ;;  %1582 = vmatpush3.bf16.msra.mxu0 %v1581_v38 }
 0x198   :  { %1583 = vmatprep.subr.bf16.mxu0 %v1644_v34  ;;  %1494 = vmatprep.mubr.msk.f32.mxu0 %vm1645_vm0, %v1646_v61 }
 0x199   :  { %1592 = vmatprep.subr.bf16.mxu1 %v1644_v34 }
 0x19a   :  { %1476 = vmatmul.mubr.msk.f32.vlgmr.msra.gmra.mrb[20].mxu1 %vm454_vm1, %v435_v5 }
 0x19b   :  { %1585 = vmatpush3.bf16.msra.mxu0 %v1584_v4  ;;  %1505 = vmatprep.mubr.msk.f32.mxu1 %vm1645_vm0, %v1646_v61  ;;  %v436_v61 = vmax.f32 %v429_v14, 0.0 }
 0x19c   :  { %1586 = vmatprep.subr.bf16.mxu0 %v1644_v34  ;;  %1594 = vmatpush3.bf16.msra.mxu1 %v1593_v16 }
 0x19d   :  { %1595 = vmatprep.subr.bf16.mxu1 %v1644_v34 }
 0x19f   :  { %1588 = vmatpush3.bf16.msra.mxu0 %v1587_v9 }
 0x1a0   :  { %1589 = vmatprep.subr.bf16.mxu0 %v1644_v34  ;;  %1597 = vmatpush3.bf16.msra.mxu1 %v1596_v18 }
 0x1a3   :  { %1591 = vmatpush3.bf16.msra.mxu0 %v1590_v13 }
 0x1a6   :  { %1495 = vmatmul.mubr.msk.f32.vlgmr.msra.gmra.mrb[22].mxu0 %vm454_vm1, %v436_v61 }
 0x249   :  { %v524_v19 = vpop.f32.mrb[16].mxu0 }
 0x24a   :  { %v1382_v20 = vpop.f32.mrb[17].mxu0 }
 0x24d   :  { %v597_v21 = vpop.f32.mrb[16].mxu1 }
 0x24e   :  { %v598_v22 = vadd.f32 %v597_v21, %v524_v19  ;;  %v1401_v24 = vpop.f32.mrb[17].mxu1 }
 0x259   :  { %v679_v25 = vpop.f32.mrb[18].mxu0 }
 0x25a   :  { %v683_v26 = vadd.f32 %v679_v25, %v598_v22  ;;  %v1420_v27 = vpop.f32.mrb[19].mxu0 }
 0x25d   :  { %v762_v23 = vpop.f32.mrb[18].mxu1 }
 0x25e   :  { %v766_v34 = vadd.f32 %v762_v23, %v683_v26  ;;  %v1439_v28 = vpop.f32.mrb[19].mxu1 }
 0x269   :  { %v845_v29 = vpop.f32.mrb[20].mxu0 }
 0x26a   :  { %v849_v30 = vadd.f32 %v845_v29, %v766_v34  ;;  %v1458_v31 = vpop.f32.mrb[21].mxu0 }
 0x26d   :  { %v928_v32 = vpop.f32.mrb[20].mxu1 }
 0x26e   :  { %v932_v33 = vadd.f32 %v928_v32, %v849_v30  ;;  %v1477_v36 = vpop.f32.mrb[21].mxu1 }
 0x279   :  { %v1011_v37 = vpop.f32.mrb[22].mxu0 }
 0x27a   :  { %v1015_v40 = vadd.f32 %v1011_v37, %v932_v33  ;;  %v1496_v41 = vpop.f32.mrb[23].mxu0 }
 0x27c   :  { %v1023_v42 = vadd.f32 %v1213_v39, %v1015_v40 }
 0x27e   :  { %v1024_v43 = vmax.f32 %v1023_v42, 0.0 }
 0x280   :  { %1506 = vmatmul.mubr.msk.f32.vlgmr.msra.gmra.mrb[22].mxu1 %vm1036_vm2, %v1024_v43 }
 0x353   :  { %v1106_v45 = vpop.f32.mrb[22].mxu1 }
 0x354   :  { %v1107_v46 = vadd.f32 %v1214_v44, %v1106_v45  ;;  %v1507_v47 = vpop.f32.mrb[23].mxu1 }
 0x356   :  { %1110 = vmax.xlane.f32.xlu1 %v1107_v46 }
 0x3e3   :  { %v1111_v48 = vpop.xlane.xlu1 %1110 }
 0x3e4   :  { %v1112_v51 = vsub.f32 %v1107_v46, %v1111_v48 }
 0x3e6   :  { %v1113_v52 = vmul.f32 1.442695, %v1112_v51 }
 0x3e8   :  { %1640 = vpow2.f32 %v1113_v52 }
 0x3f2   :  { %v1641_v53 = vpop.eup %1640 }
 0x3f3   :  { %1115 = vadd.xlane.f32.xlu0 %v1641_v53 }
 0x480   :  { %v1116_v54 = vpop.xlane.xlu0 %1115 }
 0x481   :  { %1642 = vlog2.f32 %v1116_v54 }
 0x48b   :  { %v1643_v35 = vpop.eup %1642 }
 0x48c   :  { %v1118_v55 = vmul.f32 0.6931472, %v1643_v35 }
 0x48e   :  { %v1119_v56 = vsub.f32 %v1112_v51, %v1118_v55 }
 0x490   :  { %1120 = vst [vmem:[%s2076_s8] sm:$0xff] %v1119_v56 }

</bundles_post_ra>
